<compile_context>
chip_gen: v7x
topology: tpu7x:2x2x1
jax: 0.10.0
libtpu: 0.0.40
codegen_flags: <defaults>
</compile_context>

<pallas_src>
import jax
import jax.numpy as jnp
from jax.experimental import pallas as pl
from jax.experimental.pallas import tpu as pltpu

_LANE_CANDIDATES = (2048, 1024, 512, 256, 128)
_SMALL_ARRAY_BYTES = 2 * 1024 * 1024  # below this, a single block is fine


def _round_up(v: int, m: int) -> int:
    return ((v + m - 1) // m) * m


def _round_down(v: int, m: int) -> int:
    return (v // m) * m


def _block_params():
    """Per-generation (target block bytes, scoped VMEM limit)."""
    try:
        kind = jax.devices()[0].device_kind.lower()
    except Exception:  # pragma: no cover - defensive, e.g. no devices visible
        kind = ""
    if "v7" in kind:
        # v7x: ~3.2 TB/s HBM makes the fixed per-step overhead relatively
        # expensive -> bigger blocks; 4 live buffers x 8 MiB = 32 MiB << 64 MiB.
        return 8 * 1024 * 1024, 48 * 1024 * 1024
    # v5e / v6e: 4 MiB tiles are already within ~1% of the HBM roofline.
    return 4 * 1024 * 1024, 32 * 1024 * 1024


def _relu_kernel(x_ref, o_ref):
    # Pure VPU elementwise max on the current VMEM tile.
    o_ref[...] = jnp.maximum(x_ref[...], 0).astype(o_ref.dtype)


def _relu_2d(x2: jax.Array) -> jax.Array:
    """ReLU over a lane-dense (rows, lane) view; lane is a multiple of 128."""
    rows, lane = x2.shape
    itemsize = jnp.dtype(x2.dtype).itemsize
    # Sublane multiple is dtype-aware: 8 rows (f32), 16 (bf16/f16), 32 (int8/fp8).
    sub = max(8, 32 // itemsize)

    target_block_bytes, vmem_limit_bytes = _block_params()
    total_bytes = rows * lane * itemsize

    # Rows per block: target ~target_block_bytes, rounded to the sublane multiple.
    tr = target_block_bytes // (lane * itemsize)
    tr = max(sub, _round_down(tr, sub))

    if total_bytes > _SMALL_ARRAY_BYTES:
        # Keep >= 4 grid steps so the depth-2 pipeline overlaps input/output
        # DMAs and v7x can shard the grid across both TensorCores.
        quarter = max(sub, _round_down(rows // 4, sub))
        tr = min(tr, quarter)

    if tr >= rows:
        tr = rows  # tiny array: single block covering the whole view

    # Prefer an even number of grid steps (balanced split across v7x's 2 TCs).
    steps = -(-rows // tr)
    if steps > 1 and steps % 2 == 1:
        cand = _round_up(-(-rows // (steps + 1)), sub)
        if sub <= cand < rows and (-(-rows // cand)) % 2 == 0:
            tr = cand

    grid = (pl.cdiv(rows, tr),)  # ragged last block handled by Pallas masking

    return pl.pallas_call(
        _relu_kernel,
        out_shape=jax.ShapeDtypeStruct((rows, lane), x2.dtype),
        grid_spec=pltpu.PrefetchScalarGridSpec(
            num_scalar_prefetch=0,
            grid=grid,
            in_specs=[pl.BlockSpec((tr, lane), lambda i: (i, 0))],
            out_specs=pl.BlockSpec((tr, lane), lambda i: (i, 0)),
        ),
        compiler_params=pltpu.CompilerParams(
            dimension_semantics=("parallel",),
            vmem_limit_bytes=vmem_limit_bytes,
        ),
    )(x2)


def quant_relu_forward(x: jax.Array) -> jax.Array:
    """Pallas implementation of QuantReLU.forward (standard ReLU)."""
    orig_shape = x.shape
    n = x.size
    if n == 0:
        return x

    # Widest lane width (multiple of 128) that divides the flat element count.
    lane = next((c for c in _LANE_CANDIDATES if n % c == 0), None)

    if lane is None:
        # Element count not a multiple of 128: a single fused XLA elementwise
        # maximum streams the tensor once at full HBM bandwidth, which beats
        # any slice + kernel + concatenate round-trip.
        return jnp.maximum(x, 0)

    out2 = _relu_2d(x.reshape(n // lane, lane))
    return out2.reshape(orig_shape)


class QuantReLU:
    """JAX/Pallas port of the PyTorch QuantReLU module (forward pass only).

    num_bits / observer state only affect calibration / freeze / q_forward in
    the original module; the standard forward pass is a plain ReLU.
    """

    def __init__(self, num_bits: int = 8):
        self.num_bits = num_bits
        # TODO(synk): Observer / FakeQuantize (calibration, freeze, q_forward)
        # are training-time quantization utilities with no bearing on forward().

    def __call__(self, features: jax.Array) -> jax.Array:
        return quant_relu_forward(features)

    def __repr__(self):
        return f"{self.__class__.__name__}, num_bits={self.num_bits})"


if __name__ == "__main__":
    key = jax.random.PRNGKey(0)
    # NCHW input, small shape: batch=2, channels=4, spatial=16x16.
    x = jax.random.normal(key, (2, 4, 16, 16), dtype=jnp.float32)

    layer = QuantReLU(num_bits=8)
    y = layer(x)
    y = jax.block_until_ready(y)

    # Sanity check against pure-JAX reference.
    ref = jnp.maximum(x, 0.0)
    assert y.shape == x.shape and y.dtype == x.dtype
    assert bool(jnp.allclose(y, ref)), "mismatch vs reference ReLU"

    print("KERNEL_OK")
</pallas_src>

<mosaic_0001>
module attributes {stable_mosaic.version = 11 : i64} {
  func.func @_relu_kernel(%arg0: i32, %arg1: memref<1x2048xf32, #tpu.memory_space<vmem>>, %arg2: memref<1x2048xf32, #tpu.memory_space<vmem>>) attributes {dimension_semantics = [#tpu.dimension_semantics<parallel>], iteration_bounds = array<i64: 1>, scalar_prefetch = 0 : i64, scratch_operands = 0 : i64, tpu.core_type = #tpu.core_type<tc>, window_params = [{transform_indices = @transform_0, window_bounds = array<i64: 1, 2048>}, {transform_indices = @transform_1, window_bounds = array<i64: 1, 2048>}]} {
    %c0 = arith.constant 0 : index
    %c0_0 = arith.constant 0 : index
    %0 = vector.load %arg1[%c0, %c0_0] : memref<1x2048xf32, #tpu.memory_space<vmem>>, vector<1x2048xf32>
    %cst = arith.constant 0.000000e+00 : f32
    %1 = vector.broadcast %cst : f32 to vector<1x2048xf32>
    %2 = arith.maximumf %0, %1 : vector<1x2048xf32>
    %c0_1 = arith.constant 0 : index
    %c0_2 = arith.constant 0 : index
    %3 = vector.load %arg2[%c0_1, %c0_2] : memref<1x2048xf32, #tpu.memory_space<vmem>>, vector<1x2048xf32>
    tpu.vector_store %arg2[%c0_1, %c0_2], %2 {strides = array<i32>} : memref<1x2048xf32, #tpu.memory_space<vmem>>, vector<1x2048xf32>,
    return
  }
  func.func @transform_0(%arg0: i32) -> (i32, i32) {
    %c0_i32 = arith.constant 0 : i32
    %c0_i32_0 = arith.constant 0 : i32
    return %arg0, %c0_i32 : i32, i32
  }
  func.func @transform_1(%arg0: i32) -> (i32, i32) {
    %c0_i32 = arith.constant 0 : i32
    %c0_i32_0 = arith.constant 0 : i32
    return %arg0, %c0_i32 : i32, i32
  }
}

</mosaic_0001>

<bundles_post_ra>
// kernel: tpu_custom_call.1
= control target key start
LH: loop header
LB: loop body
LE: loop exit
PB: predicated region body
PF: predicated region fallthrough
CT: control target
= control target key end

     0   :  { %6 = vsyncpa [#allocation3], 0  ;;  %s128_s0 = inlined_call_operand.hbm [shape: f32[1,2048], index: 0, kind: input, shape index: {}]   ;;  %s129_s1 = inlined_call_operand.hbm [shape: f32[1,2048], index: 1, kind: output, shape index: {}]  }
   0x1   :  { %7 = vsyncpa [#allocation4], 0  ;;  %s92_s6 = smov [#allocation2]   ;;  %s44_s10 = scalar_lea.hbm %s128_s0, 256 }
   0x2   :  { %s14_s7 = sshll.u32 %s92_s6, 4  ;;  %p45_p0 = scmp.ne.s32.totalorder %s128_s0, %s44_s10  ;;  %s15_s7 = int_to_ptr.vmem [resolvable:$true] %s14_s7 }
   0x3   :  { %p48_p1 = scmp.lt.u32.totalorder %s44_s10, %s128_s0 }
   0x5   :  { %p50_p2 = pnand %p48_p1, %p45_p0 }
   0x7   :  { %53 = shalt.err (!%p50_p2)
}
   0x8   :  { %s54_s15 = scalar_lea.vmem %s15_s7, 256  ;;  %p59_p4 = scmp.lt.s32.totalorder %s15_s7, %s15_s7 }
   0x9   :  { %p55_p3 = scmp.ne.s32.totalorder %s15_s7, %s54_s15  ;;  %p60_p5 = scmp.lt.s32.totalorder %s54_s15, %s54_s15 }
   0xb   :  { %p61_p6 = por %p60_p5, %p59_p4 }
   0xd   :  { %p62_p7 = pnand %p61_p6, %p55_p3 }
   0xf   :  { %65 = shalt.err (!%p62_p7)
}
  0x10   :  { %17 = dma.hbm_to_vmem [thread:$0]  %s128_s0, 256, %s15_s7, [#allocation3]  }
  0x11   :  { %88 = dma.done.wait [#allocation3], 256  }
  0x12   :  { %89 = vsyncadd [#allocation3], 4294967040  ;;  %s93_s18 = smov [#allocation5]   ;;  %v21_v0 = vld [vmem:[#allocation2] sm:$0xff]  ;;  %v22_v1 = vld [vmem:[#allocation2 + $0x8] sm:$0xff] }
  0x13   :  { %s33_s19 = sshll.u32 %s93_s18, 4  ;;  %v23_v2 = vmax.f32 %v21_v0, 0.0  ;;  %v24_v3 = vmax.f32 %v22_v1, 0.0  ;;  %s34_s19 = int_to_ptr.vmem [resolvable:$true] %s33_s19 }
  0x14   :  { %s66_s20 = scalar_lea.vmem %s34_s19, 256  ;;  %p71_p9 = scmp.lt.s32.totalorder %s34_s19, %s34_s19 }
  0x15   :  { %25 = vst [vmem:[#allocation5] sm:$0xff] %v23_v2  ;;  %26 = vst [vmem:[#allocation5 + $0x8] sm:$0xff] %v24_v3  ;;  %p67_p8 = scmp.ne.s32.totalorder %s34_s19, %s66_s20  ;;  %p72_p10 = scmp.lt.s32.totalorder %s66_s20, %s66_s20 }
  0x17   :  { %p73_p11 = por %p72_p10, %p71_p9 }
  0x19   :  { %p74_p12 = pnand %p73_p11, %p67_p8 }
  0x1b   :  { %77 = shalt.err (!%p74_p12)
}
  0x1c   :  { %s78_s22 = scalar_lea.hbm %s129_s1, 256 }
  0x1d   :  { %p79_p13 = scmp.ne.s32.totalorder %s129_s1, %s78_s22  ;;  %p82_p0 = scmp.lt.u32.totalorder %s78_s22, %s129_s1 }
  0x1f   :  { %p84_p1 = pnand %p82_p0, %p79_p13 }
  0x21   :  { %87 = shalt.err (!%p84_p1)
}
  0x22   :  { %36 = dma.vmem_to_hbm [thread:$0]  %s34_s19, 256, %s129_s1, [#allocation4]  }
  0x23   :  { %90 = dma.done.wait [#allocation4], 256  }
  0x24   :  { %91 = vsyncadd [#allocation4], 4294967040 }
  0x25   :  { %40 = vsyncpa [#allocation3], 1 }
  0x26   :  { %41 = vsyncpa [#allocation4], 1 }

</bundles_post_ra>
